<compile_context>
chip_gen: v6e
topology: v6e:2x2x1
jax: 0.10.0
libtpu: 0.0.40
codegen_flags: <defaults>
</compile_context>

<pallas_src>
import functools

import numpy as np
import jax
import jax.numpy as jnp
from jax import lax
from jax.experimental import pallas as pl
from jax.experimental.pallas import tpu as pltpu


def _round_up(x, m):
    return ((x + m - 1) // m) * m


def _leaky(t, slope):
    return jnp.where(t >= 0, t, slope * t)


# ----------------------------------------------------------------------------
# Fused ResnetBlock kernel: one (batch, length-tile) grid step.
#   xc_ref : (1, C, T)    input tile (auto-pipelined, ragged last block OK)
#   lh_ref : (1, 1, C, d) left halo / left reflection edge for this tile
#   rh_ref : (1, 1, C, d) right halo / right reflection edge for this tile
#   wb_ref : (2C, 4C) fused [[w3,0],[0,ws]]  (or (C, 3C) when not fused)
#   w1_ref : (C, C)   second 1x1 conv weight
#   ws_ref : (C, C)   shortcut weight (unused when fused)
#   b*_ref : (C, 1)   biases (f32)
#   o_ref  : (1, C, T) output tile
#   rhs_ref: (4C or 3C, T) VMEM im2col scratch (compute dtype)
# ----------------------------------------------------------------------------
def resnet_block_kernel(xc_ref, lh_ref, rh_ref, wb_ref, w1_ref, ws_ref,
                        b3_ref, b1_ref, bs_ref, o_ref, rhs_ref, *,
                        dim, dilation, tile_l, num_tiles, last_valid,
                        negative_slope, compute_dtype, fuse_shortcut):
    C, d, T, v = dim, dilation, tile_l, last_valid
    cd = compute_dtype
    slope = negative_slope
    j = pl.program_id(1)

    # LeakyReLU(0.2) on the raw input tile (f32 for the epilogue math).
    xc = xc_ref[0].astype(jnp.float32)                       # (C, T)
    act = _leaky(xc, slope)

    # ---- im2col: fold the 3 dilated taps (+ raw x for the fused shortcut)
    # into the contraction dimension of ONE MXU matmul. ----------------------
    rhs_ref[C:2 * C, :] = act.astype(cd)                     # center tap
    rhs_ref[0:C, d:] = act[:, :T - d].astype(cd)             # left tap  (main)
    rhs_ref[2 * C:3 * C, :T - d] = act[:, d:].astype(cd)     # right tap (main)
    if fuse_shortcut:
        rhs_ref[3 * C:4 * C, :] = xc.astype(cd)              # raw x (shortcut)

    # Halo columns: left/right neighbour columns of this tile, or the
    # reflected sequence edges -- precomputed per tile on the host (2*d cols).
    lh = _leaky(lh_ref[0, 0].astype(jnp.float32), slope)
    rh = _leaky(rh_ref[0, 0].astype(jnp.float32), slope)
    rhs_ref[0:C, 0:d] = lh.astype(cd)
    rhs_ref[2 * C:3 * C, T - d:] = rh.astype(cd)

    # Last tile: the right-reflection boundary (sequence end) lies inside the
    # tile, so patch the d right-tap columns that read past the end.  For the
    # last tile rh_ref holds exactly the reflected edge x[L-2], ..., x[L-1-d].
    @pl.when(j == num_tiles - 1)
    def _():
        re_act = _leaky(rh_ref[0, 0].astype(jnp.float32), slope)
        if v >= d:
            rhs_ref[2 * C:3 * C, v - d:v] = re_act.astype(cd)
        else:
            rhs_ref[2 * C:3 * C, 0:v] = re_act[:, d - v:].astype(cd)

    # ---- MXU matmuls (f32 accumulation) ------------------------------------
    res = jnp.dot(wb_ref[...], rhs_ref[...],
                  preferred_element_type=jnp.float32)
    if fuse_shortcut:
        y3 = res[:C] + b3_ref[...]                           # dilated conv
        s = res[C:] + bs_ref[...]                            # shortcut
    else:
        y3 = res + b3_ref[...]
        s = jnp.dot(ws_ref[...], xc.astype(cd),
                    preferred_element_type=jnp.float32) + bs_ref[...]

    h2 = _leaky(y3, slope).astype(cd)
    y = jnp.dot(w1_ref[...], h2,
                preferred_element_type=jnp.float32) + b1_ref[...]

    o_ref[0] = (s + y).astype(o_ref.dtype)


# ----------------------------------------------------------------------------
# Weight-norm + wrapper
# ----------------------------------------------------------------------------
def weight_norm_weight(v, g):
    return g * v / jnp.sqrt(jnp.sum(v * v, axis=(1, 2), keepdims=True))


def _pick_tile_l(batch, C, L, in_b, out_b, cd_b, kc_rows):
    per_col = (2 * C * in_b + 2 * C * out_b + kc_rows * cd_b
               + 2 * C * cd_b + 8 * C * 4)
    budget = 24 * 1024 * 1024
    mem_cols = max(128, (budget // max(per_col, 1)) // 128 * 128)
    t = min(2048, _round_up(L, 128), mem_cols)
    if batch == 1 and L > 128:
        # keep at least two length tiles so both v7x TensorCores get work
        t = min(t, max(128, _round_up(-(-L // 2), 128)))
    return max(128, int(t))


def resnet_block_forward(x, params, *, dilation=1, tile_l=None,
                         compute_dtype=jnp.float32, out_dtype=None,
                         fuse_shortcut=None, negative_slope=0.2):
    """x: (N, C, L).  params = ((v3,g3,b3), (v1,g1,b1), (vs,gs,bs))."""
    (v3, g3, b3), (v1, g1, b1), (vs, gs, bs) = params
    N, C, L = x.shape
    d = int(dilation)
    assert 1 <= d <= L - 1, "ReflectionPad1d requires 1 <= dilation <= L-1"
    assert C % 8 == 0, "channel dim must be a multiple of 8 for this kernel"

    if out_dtype is None:
        out_dtype = x.dtype
    if fuse_shortcut is None:
        fuse_shortcut = C <= 64          # small C: merge shortcut into the MXU matmul
    kc_rows = 4 * C if fuse_shortcut else 3 * C

    in_b = jnp.dtype(x.dtype).itemsize
    out_b = jnp.dtype(out_dtype).itemsize
    cd_b = jnp.dtype(compute_dtype).itemsize
    if tile_l is None:
        tile_l = _pick_tile_l(N, C, L, in_b, out_b, cd_b, kc_rows)
    tile_l = max(128, _round_up(int(tile_l), 128))
    assert d < tile_l, "dilation must be smaller than the length tile"
    nt = -(-L // tile_l)
    v = L - (nt - 1) * tile_l            # valid columns of the last tile

    # --- weight-norm reparameterization + weight packing (tiny, host side) ---
    w3 = weight_norm_weight(v3, g3)                      # (C, C, 3)
    w1 = weight_norm_weight(v1, g1)[:, :, 0]             # (C, C)
    ws = weight_norm_weight(vs, gs)[:, :, 0]             # (C, C)
    w3m = jnp.concatenate([w3[:, :, 0], w3[:, :, 1], w3[:, :, 2]], axis=1)
    if fuse_shortcut:
        wb = jnp.zeros((2 * C, 4 * C), jnp.float32)
        wb = wb.at[:C, :3 * C].set(w3m).at[C:, 3 * C:].set(ws)
    else:
        wb = w3m
    wb = wb.astype(compute_dtype)
    w1m = w1.astype(compute_dtype)
    wsm = ws.astype(compute_dtype)
    b3c = b3.reshape(C, 1).astype(jnp.float32)
    b1c = b1.reshape(C, 1).astype(jnp.float32)
    bsc = bs.reshape(C, 1).astype(jnp.float32)

    # --- per-tile halo columns (2*d per tile; reflection handled here) ------
    left_edge = jnp.flip(x[:, :, 1:d + 1], axis=2)            # x[d], ..., x[1]
    right_edge = jnp.flip(x[:, :, L - 1 - d:L - 1], axis=2)   # x[L-2], ..., x[L-1-d]
    lcols = [left_edge]
    for t in range(1, nt):
        lcols.append(lax.slice_in_dim(x, t * tile_l - d, t * tile_l, axis=2))
    rcols = []
    for t in range(nt - 1):
        s0 = (t + 1) * tile_l
        if s0 + d <= L:
            rcols.append(lax.slice_in_dim(x, s0, s0 + d, axis=2))
        else:   # penultimate tile whose right halo crosses the sequence end
            rcols.append(jnp.concatenate(
                [lax.slice_in_dim(x, s0, L, axis=2),
                 right_edge[:, :, :s0 + d - L]], axis=2))
    rcols.append(right_edge)
    lhal = jnp.stack(lcols, axis=1)                           # (N, nt, C, d)
    rhal = jnp.stack(rcols, axis=1)                           # (N, nt, C, d)

    kernel = functools.partial(
        resnet_block_kernel, dim=C, dilation=d, tile_l=tile_l, num_tiles=nt,
        last_valid=v, negative_slope=negative_slope,
        compute_dtype=compute_dtype, fuse_shortcut=fuse_shortcut)

    # VMEM budget from the actual buffer sizes (double-buffered in/out tiles,
    # im2col scratch, f32 temporaries, resident weights) plus headroom.
    vmem_est = tile_l * (2 * C * in_b + 2 * C * out_b + kc_rows * cd_b
                         + 2 * C * cd_b + 8 * C * 4)
    vmem_est += (kc_rows * 2 * C + 2 * C * C) * cd_b + 4 * 1024 * 1024
    vmem_limit = int(min(64 * 1024 * 1024,
                         max(32 * 1024 * 1024, (vmem_est * 3) // 2)))

    out = pl.pallas_call(
        kernel,
        out_shape=jax.ShapeDtypeStruct((N, C, L), out_dtype),
        grid_spec=pltpu.PrefetchScalarGridSpec(
            num_scalar_prefetch=0,
            grid=(N, nt),
            in_specs=[
                pl.BlockSpec((1, C, tile_l), lambda b, j: (b, 0, j)),   # x tile
                pl.BlockSpec((1, 1, C, d), lambda b, j: (b, j, 0, 0)),  # left halo
                pl.BlockSpec((1, 1, C, d), lambda b, j: (b, j, 0, 0)),  # right halo
                pl.BlockSpec(wb.shape, lambda b, j: (0, 0)),            # fused/conv3 W
                pl.BlockSpec((C, C), lambda b, j: (0, 0)),              # 1x1 W
                pl.BlockSpec((C, C), lambda b, j: (0, 0)),              # shortcut W
                pl.BlockSpec((C, 1), lambda b, j: (0, 0)),
                pl.BlockSpec((C, 1), lambda b, j: (0, 0)),
                pl.BlockSpec((C, 1), lambda b, j: (0, 0)),
            ],
            out_specs=pl.BlockSpec((1, C, tile_l), lambda b, j: (b, 0, j)),
            scratch_shapes=[pltpu.VMEM((kc_rows, tile_l), compute_dtype)],
        ),
        compiler_params=pltpu.CompilerParams(
            dimension_semantics=("parallel", "parallel"),
            vmem_limit_bytes=vmem_limit),
    )(x, lhal, rhal, wb, w1m, wsm, b3c, b1c, bsc)
    return out


# ----------------------------------------------------------------------------
# Parameter init (mirrors weight_norm(nn.Conv1d) at init: w == v, g == ||v||)
# ----------------------------------------------------------------------------
def init_resnet_block_params(key, dim):
    def init_wnconv(k, c_out, c_in, ksize):
        kv, kb = jax.random.split(k)
        bound = 1.0 / np.sqrt(c_in * ksize)
        v = jax.random.uniform(kv, (c_out, c_in, ksize), minval=-bound,
                               maxval=bound, dtype=jnp.float32)
        g = jnp.sqrt(jnp.sum(v * v, axis=(1, 2), keepdims=True))
        b = jax.random.uniform(kb, (c_out,), minval=-bound, maxval=bound,
                               dtype=jnp.float32)
        return v, g, b

    k3, k1, ks = jax.random.split(key, 3)
    return (init_wnconv(k3, dim, dim, 3),    # block conv (kernel 3, dilated)
            init_wnconv(k1, dim, dim, 1),    # block conv (1x1)
            init_wnconv(ks, dim, dim, 1))    # shortcut conv (1x1)


# ----------------------------------------------------------------------------
# Pure-JAX reference for validation
# ----------------------------------------------------------------------------
def ref_resnet_block(x, params, *, dilation=1, negative_slope=0.2):
    (v3, g3, b3), (v1, g1, b1), (vs, gs, bs) = params
    w3 = weight_norm_weight(v3, g3)
    w1 = weight_norm_weight(v1, g1)
    ws = weight_norm_weight(vs, gs)

    def leaky(t):
        return jnp.where(t >= 0, t, negative_slope * t)

    def conv(t, w, dil=1):
        return lax.conv_general_dilated(
            t, w, window_strides=(1,), padding=((0, 0),),
            rhs_dilation=(dil,), dimension_numbers=("NCH", "OIH", "NCH"),
            precision=lax.Precision.HIGHEST)

    h = leaky(x)
    h = jnp.pad(h, ((0, 0), (0, 0), (dilation, dilation)), mode="reflect")
    y = conv(h, w3, dil=dilation) + b3.reshape(1, -1, 1)
    y = leaky(y)
    y = conv(y, w1) + b1.reshape(1, -1, 1)
    s = conv(x, ws) + bs.reshape(1, -1, 1)
    return s + y


if __name__ == "__main__":
    key = jax.random.PRNGKey(0)
    kp, kx = jax.random.split(key)
    dim = 32
    params = init_resnet_block_params(kp, dim)

    def check(x, dilation, tile_l=None, compute_dtype=jnp.float32,
              fuse_shortcut=None, rtol=1e-2, atol=1e-2):
        out = jax.block_until_ready(resnet_block_forward(
            x, params, dilation=dilation, tile_l=tile_l,
            compute_dtype=compute_dtype, fuse_shortcut=fuse_shortcut))
        ref = ref_resnet_block(x.astype(jnp.float32), params,
                               dilation=dilation)
        np.testing.assert_allclose(np.asarray(out.astype(jnp.float32)),
                                   np.asarray(ref), rtol=rtol, atol=atol)

    # 1) tile-aligned length, dilation 1, two tiles (first + last).
    x1 = jax.random.normal(kx, (2, dim, 256), dtype=jnp.float32)
    check(x1, dilation=1, tile_l=128)

    # 2) ragged length + dilation 3 (last-tile reflection patch), fused path.
    x2 = jax.random.normal(jax.random.fold_in(kx, 1), (2, dim, 200),
                           dtype=jnp.float32)
    check(x2, dilation=3, tile_l=128)

    # 3) same shapes with the un-fused shortcut matmul path.
    check(x2, dilation=3, tile_l=128, fuse_shortcut=False)

    # 4) three tiles including an interior tile, larger dilation, batch 1.
    x3 = jax.random.normal(jax.random.fold_in(kx, 2), (1, dim, 300),
                           dtype=jnp.float32)
    check(x3, dilation=9, tile_l=128)

    # 5) penultimate tile whose right halo crosses the sequence end (v < d).
    x4 = jax.random.normal(jax.random.fold_in(kx, 3), (2, dim, 258),
                           dtype=jnp.float32)
    check(x4, dilation=9, tile_l=128)

    # 6) default tile_l heuristic (single ragged tile of 256).
    check(x2, dilation=3)

    # 7) bf16 input/output with bf16 MXU inputs (f32 accumulation).
    check(x1.astype(jnp.bfloat16), dilation=1, tile_l=128,
          compute_dtype=jnp.bfloat16, rtol=8e-2, atol=8e-2)

    print("KERNEL_OK")
</pallas_src>

<mosaic_0001>
module attributes {stable_mosaic.version = 11 : i64} {
  func.func @resnet_block_kernel(%arg0: i32, %arg1: i32, %arg2: memref<1x32x128xf32, #tpu.memory_space<vmem>>, %arg3: memref<1x1x32x1xf32, #tpu.memory_space<vmem>>, %arg4: memref<1x1x32x1xf32, #tpu.memory_space<vmem>>, %arg5: memref<64x128xf32, #tpu.memory_space<vmem>>, %arg6: memref<32x32xf32, #tpu.memory_space<vmem>>, %arg7: memref<32x32xf32, #tpu.memory_space<vmem>>, %arg8: memref<32x1xf32, #tpu.memory_space<vmem>>, %arg9: memref<32x1xf32, #tpu.memory_space<vmem>>, %arg10: memref<32x1xf32, #tpu.memory_space<vmem>>, %arg11: memref<1x32x128xf32, #tpu.memory_space<vmem>>, %arg12: memref<128x128xf32, #tpu.memory_space<vmem>>) attributes {dimension_semantics = [#tpu.dimension_semantics<parallel>, #tpu.dimension_semantics<parallel>], iteration_bounds = array<i64: 2, 2>, scalar_prefetch = 0 : i64, scratch_operands = 1 : i64, tpu.core_type = #tpu.core_type<tc>, window_params = [{transform_indices = @transform_0, window_bounds = array<i64: 1, 32, 128>}, {transform_indices = @transform_1, window_bounds = array<i64: 1, 1, 32, 1>}, {transform_indices = @transform_2, window_bounds = array<i64: 1, 1, 32, 1>}, {pipeline_mode = #tpu.pipeline_mode<synchronous>, transform_indices = @transform_3, window_bounds = array<i64: 64, 128>}, {pipeline_mode = #tpu.pipeline_mode<synchronous>, transform_indices = @transform_4, window_bounds = array<i64: 32, 32>}, {pipeline_mode = #tpu.pipeline_mode<synchronous>, transform_indices = @transform_5, window_bounds = array<i64: 32, 32>}, {pipeline_mode = #tpu.pipeline_mode<synchronous>, transform_indices = @transform_6, window_bounds = array<i64: 32, 1>}, {pipeline_mode = #tpu.pipeline_mode<synchronous>, transform_indices = @transform_7, window_bounds = array<i64: 32, 1>}, {pipeline_mode = #tpu.pipeline_mode<synchronous>, transform_indices = @transform_8, window_bounds = array<i64: 32, 1>}, {transform_indices = @transform_9, window_bounds = array<i64: 1, 32, 128>}]} {
    %c0 = arith.constant 0 : index
    %c0_0 = arith.constant 0 : index
    %c0_1 = arith.constant 0 : index
    %0 = vector.load %arg2[%c0, %c0_0, %c0_1] : memref<1x32x128xf32, #tpu.memory_space<vmem>>, vector<1x32x128xf32>
    %1 = vector.shape_cast %0 : vector<1x32x128xf32> to vector<32x128xf32>
    %cst = arith.constant 0.000000e+00 : f32
    %2 = vector.broadcast %cst : f32 to vector<32x128xf32>
    %3 = arith.cmpf oge, %1, %2 : vector<32x128xf32>
    %cst_2 = arith.constant 2.000000e-01 : f32
    %4 = vector.broadcast %cst_2 : f32 to vector<32x128xf32>
    %5 = arith.mulf %4, %1 : vector<32x128xf32>
    %6 = arith.select %3, %1, %5 : vector<32x128xi1>, vector<32x128xf32>
    %c32 = arith.constant 32 : index
    %c0_3 = arith.constant 0 : index
    %7 = vector.load %arg12[%c32, %c0_3] : memref<128x128xf32, #tpu.memory_space<vmem>>, vector<32x128xf32>
    tpu.vector_store %arg12[%c32, %c0_3], %6 {strides = array<i32>} : memref<128x128xf32, #tpu.memory_space<vmem>>, vector<32x128xf32>,
    %8 = vector.extract_strided_slice %6 {offsets = [0, 0], sizes = [32, 127], strides = [1, 1]} : vector<32x128xf32> to vector<32x127xf32>
    %c0_4 = arith.constant 0 : index
    %c1 = arith.constant 1 : index
    %9 = vector.load %arg12[%c0_4, %c1] : memref<128x128xf32, #tpu.memory_space<vmem>>, vector<32x127xf32>
    tpu.vector_store %arg12[%c0_4, %c1], %8 {strides = array<i32>} : memref<128x128xf32, #tpu.memory_space<vmem>>, vector<32x127xf32>,
    %10 = vector.extract_strided_slice %6 {offsets = [0, 1], sizes = [32, 127], strides = [1, 1]} : vector<32x128xf32> to vector<32x127xf32>
    %c64 = arith.constant 64 : index
    %c0_5 = arith.constant 0 : index
    %11 = vector.load %arg12[%c64, %c0_5] : memref<128x128xf32, #tpu.memory_space<vmem>>, vector<32x127xf32>
    tpu.vector_store %arg12[%c64, %c0_5], %10 {strides = array<i32>} : memref<128x128xf32, #tpu.memory_space<vmem>>, vector<32x127xf32>,
    %c96 = arith.constant 96 : index
    %c0_6 = arith.constant 0 : index
    %12 = vector.load %arg12[%c96, %c0_6] : memref<128x128xf32, #tpu.memory_space<vmem>>, vector<32x128xf32>
    tpu.vector_store %arg12[%c96, %c0_6], %1 {strides = array<i32>} : memref<128x128xf32, #tpu.memory_space<vmem>>, vector<32x128xf32>,
    %c0_7 = arith.constant 0 : index
    %c0_8 = arith.constant 0 : index
    %c0_9 = arith.constant 0 : index
    %c0_10 = arith.constant 0 : index
    %13 = vector.load %arg3[%c0_7, %c0_8, %c0_9, %c0_10] : memref<1x1x32x1xf32, #tpu.memory_space<vmem>>, vector<1x1x32x1xf32>
    %14 = vector.shape_cast %13 : vector<1x1x32x1xf32> to vector<32x1xf32>
    %cst_11 = arith.constant 0.000000e+00 : f32
    %15 = vector.broadcast %cst_11 : f32 to vector<32x1xf32>
    %16 = arith.cmpf oge, %14, %15 : vector<32x1xf32>
    %cst_12 = arith.constant 2.000000e-01 : f32
    %17 = vector.broadcast %cst_12 : f32 to vector<32x1xf32>
    %18 = arith.mulf %17, %14 : vector<32x1xf32>
    %19 = arith.select %16, %14, %18 : vector<32x1xi1>, vector<32x1xf32>
    %c0_13 = arith.constant 0 : index
    %c0_14 = arith.constant 0 : index
    %c0_15 = arith.constant 0 : index
    %c0_16 = arith.constant 0 : index
    %20 = vector.load %arg4[%c0_13, %c0_14, %c0_15, %c0_16] : memref<1x1x32x1xf32, #tpu.memory_space<vmem>>, vector<1x1x32x1xf32>
    %21 = vector.shape_cast %20 : vector<1x1x32x1xf32> to vector<32x1xf32>
    %cst_17 = arith.constant 0.000000e+00 : f32
    %22 = vector.broadcast %cst_17 : f32 to vector<32x1xf32>
    %23 = arith.cmpf oge, %21, %22 : vector<32x1xf32>
    %cst_18 = arith.constant 2.000000e-01 : f32
    %24 = vector.broadcast %cst_18 : f32 to vector<32x1xf32>
    %25 = arith.mulf %24, %21 : vector<32x1xf32>
    %26 = arith.select %23, %21, %25 : vector<32x1xi1>, vector<32x1xf32>
    %c0_19 = arith.constant 0 : index
    %c0_20 = arith.constant 0 : index
    %27 = vector.load %arg12[%c0_19, %c0_20] : memref<128x128xf32, #tpu.memory_space<vmem>>, vector<32x1xf32>
    tpu.vector_store %arg12[%c0_19, %c0_20], %19 {strides = array<i32>} : memref<128x128xf32, #tpu.memory_space<vmem>>, vector<32x1xf32>,
    %c64_21 = arith.constant 64 : index
    %c127 = arith.constant 127 : index
    %28 = vector.load %arg12[%c64_21, %c127] : memref<128x128xf32, #tpu.memory_space<vmem>>, vector<32x1xf32>
    tpu.vector_store %arg12[%c64_21, %c127], %26 {strides = array<i32>} : memref<128x128xf32, #tpu.memory_space<vmem>>, vector<32x1xf32>,
    %c1_i32 = arith.constant 1 : i32
    %29 = arith.cmpi eq, %arg1, %c1_i32 : i32
    %30 = arith.extui %29 : i1 to i32
    %c0_i32 = arith.constant 0 : i32
    %31 = arith.cmpi ne, %30, %c0_i32 : i32
    scf.if %31 {
      %c0_41 = arith.constant 0 : index
      %c0_42 = arith.constant 0 : index
      %c0_43 = arith.constant 0 : index
      %c0_44 = arith.constant 0 : index
      %57 = vector.load %arg4[%c0_41, %c0_42, %c0_43, %c0_44] : memref<1x1x32x1xf32, #tpu.memory_space<vmem>>, vector<1x1x32x1xf32>
      %58 = vector.shape_cast %57 : vector<1x1x32x1xf32> to vector<32x1xf32>
      %cst_45 = arith.constant 0.000000e+00 : f32
      %59 = vector.broadcast %cst_45 : f32 to vector<32x1xf32>
      %60 = arith.cmpf oge, %58, %59 : vector<32x1xf32>
      %cst_46 = arith.constant 2.000000e-01 : f32
      %61 = vector.broadcast %cst_46 : f32 to vector<32x1xf32>
      %62 = arith.mulf %61, %58 : vector<32x1xf32>
      %63 = arith.select %60, %58, %62 : vector<32x1xi1>, vector<32x1xf32>
      %c64_47 = arith.constant 64 : index
      %c127_48 = arith.constant 127 : index
      %64 = vector.load %arg12[%c64_47, %c127_48] : memref<128x128xf32, #tpu.memory_space<vmem>>, vector<32x1xf32>
      tpu.vector_store %arg12[%c64_47, %c127_48], %63 {strides = array<i32>} : memref<128x128xf32, #tpu.memory_space<vmem>>, vector<32x1xf32>,
    } else {
    }
    %c0_22 = arith.constant 0 : index
    %c0_23 = arith.constant 0 : index
    %32 = vector.load %arg5[%c0_22, %c0_23] : memref<64x128xf32, #tpu.memory_space<vmem>>, vector<64x128xf32>
    %c0_24 = arith.constant 0 : index
    %c0_25 = arith.constant 0 : index
    %33 = vector.load %arg12[%c0_24, %c0_25] : memref<128x128xf32, #tpu.memory_space<vmem>>, vector<128x128xf32>
    %cst_26 = arith.constant dense<0.000000e+00> : vector<64x128xf32>
    %34 = tpu.matmul %32, %33, %cst_26 {dimension_numbers = #tpu.dot_dimension_numbers<[1], [0], [0], [1], [0, 0, 1, 1], [], []>} : vector<64x128xf32>, vector<128x128xf32>, vector<64x128xf32> -> vector<64x128xf32>
    %35 = vector.extract_strided_slice %34 {offsets = [0, 0], sizes = [32, 128], strides = [1, 1]} : vector<64x128xf32> to vector<32x128xf32>
    %c0_27 = arith.constant 0 : index
    %c0_28 = arith.constant 0 : index
    %36 = vector.load %arg8[%c0_27, %c0_28] : memref<32x1xf32, #tpu.memory_space<vmem>>, vector<32x1xf32>
    %37 = vector.broadcast %36 : vector<32x1xf32> to vector<32x128xf32>
    %38 = arith.addf %35, %37 : vector<32x128xf32>
    %39 = vector.extract_strided_slice %34 {offsets = [32, 0], sizes = [32, 128], strides = [1, 1]} : vector<64x128xf32> to vector<32x128xf32>
    %c0_29 = arith.constant 0 : index
    %c0_30 = arith.constant 0 : index
    %40 = vector.load %arg10[%c0_29, %c0_30] : memref<32x1xf32, #tpu.memory_space<vmem>>, vector<32x1xf32>
    %41 = vector.broadcast %40 : vector<32x1xf32> to vector<32x128xf32>
    %42 = arith.addf %39, %41 : vector<32x128xf32>
    %cst_31 = arith.constant 0.000000e+00 : f32
    %43 = vector.broadcast %cst_31 : f32 to vector<32x128xf32>
    %44 = arith.cmpf oge, %38, %43 : vector<32x128xf32>
    %cst_32 = arith.constant 2.000000e-01 : f32
    %45 = vector.broadcast %cst_32 : f32 to vector<32x128xf32>
    %46 = arith.mulf %45, %38 : vector<32x128xf32>
    %47 = arith.select %44, %38, %46 : vector<32x128xi1>, vector<32x128xf32>
    %c0_33 = arith.constant 0 : index
    %c0_34 = arith.constant 0 : index
    %48 = vector.load %arg6[%c0_33, %c0_34] : memref<32x32xf32, #tpu.memory_space<vmem>>, vector<32x32xf32>
    %cst_35 = arith.constant dense<0.000000e+00> : vector<32x128xf32>
    %49 = tpu.matmul %48, %47, %cst_35 {dimension_numbers = #tpu.dot_dimension_numbers<[1], [0], [0], [1], [0, 0, 1, 1], [], []>} : vector<32x32xf32>, vector<32x128xf32>, vector<32x128xf32> -> vector<32x128xf32>
    %c0_36 = arith.constant 0 : index
    %c0_37 = arith.constant 0 : index
    %50 = vector.load %arg9[%c0_36, %c0_37] : memref<32x1xf32, #tpu.memory_space<vmem>>, vector<32x1xf32>
    %51 = vector.broadcast %50 : vector<32x1xf32> to vector<32x128xf32>
    %52 = arith.addf %49, %51 : vector<32x128xf32>
    %53 = arith.addf %42, %52 : vector<32x128xf32>
    %c0_38 = arith.constant 0 : index
    %c0_39 = arith.constant 0 : index
    %c0_40 = arith.constant 0 : index
    %54 = vector.load %arg11[%c0_38, %c0_39, %c0_40] : memref<1x32x128xf32, #tpu.memory_space<vmem>>, vector<1x32x128xf32>
    %55 = vector.shape_cast %54 : vector<1x32x128xf32> to vector<32x128xf32>
    %56 = vector.shape_cast %53 : vector<32x128xf32> to vector<1x32x128xf32>
    tpu.vector_store %arg11[%c0_38, %c0_39, %c0_40], %56 {strides = array<i32>} : memref<1x32x128xf32, #tpu.memory_space<vmem>>, vector<1x32x128xf32>,
    return
  }
  func.func @transform_0(%arg0: i32, %arg1: i32) -> (i32, i32, i32) {
    %c0_i32 = arith.constant 0 : i32
    %c0_i32_0 = arith.constant 0 : i32
    return %arg0, %c0_i32, %arg1 : i32, i32, i32
  }
  func.func @transform_1(%arg0: i32, %arg1: i32) -> (i32, i32, i32, i32) {
    %c0_i32 = arith.constant 0 : i32
    %c0_i32_0 = arith.constant 0 : i32
    %c0_i32_1 = arith.constant 0 : i32
    return %arg0, %arg1, %c0_i32, %c0_i32_0 : i32, i32, i32, i32
  }
  func.func @transform_2(%arg0: i32, %arg1: i32) -> (i32, i32, i32, i32) {
    %c0_i32 = arith.constant 0 : i32
    %c0_i32_0 = arith.constant 0 : i32
    %c0_i32_1 = arith.constant 0 : i32
    return %arg0, %arg1, %c0_i32, %c0_i32_0 : i32, i32, i32, i32
  }
  func.func @transform_3(%arg0: i32, %arg1: i32) -> (i32, i32) {
    %c0_i32 = arith.constant 0 : i32
    %c0_i32_0 = arith.constant 0 : i32
    %c0_i32_1 = arith.constant 0 : i32
    return %c0_i32, %c0_i32_0 : i32, i32
  }
  func.func @transform_4(%arg0: i32, %arg1: i32) -> (i32, i32) {
    %c0_i32 = arith.constant 0 : i32
    %c0_i32_0 = arith.constant 0 : i32
    %c0_i32_1 = arith.constant 0 : i32
    return %c0_i32, %c0_i32_0 : i32, i32
  }
  func.func @transform_5(%arg0: i32, %arg1: i32) -> (i32, i32) {
    %c0_i32 = arith.constant 0 : i32
    %c0_i32_0 = arith.constant 0 : i32
    %c0_i32_1 = arith.constant 0 : i32
    return %c0_i32, %c0_i32_0 : i32, i32
  }
  func.func @transform_6(%arg0: i32, %arg1: i32) -> (i32, i32) {
    %c0_i32 = arith.constant 0 : i32
    %c0_i32_0 = arith.constant 0 : i32
    %c0_i32_1 = arith.constant 0 : i32
    return %c0_i32, %c0_i32_0 : i32, i32
  }
  func.func @transform_7(%arg0: i32, %arg1: i32) -> (i32, i32) {
    %c0_i32 = arith.constant 0 : i32
    %c0_i32_0 = arith.constant 0 : i32
    %c0_i32_1 = arith.constant 0 : i32
    return %c0_i32, %c0_i32_0 : i32, i32
  }
  func.func @transform_8(%arg0: i32, %arg1: i32) -> (i32, i32) {
    %c0_i32 = arith.constant 0 : i32
    %c0_i32_0 = arith.constant 0 : i32
    %c0_i32_1 = arith.constant 0 : i32
    return %c0_i32, %c0_i32_0 : i32, i32
  }
  func.func @transform_9(%arg0: i32, %arg1: i32) -> (i32, i32, i32) {
    %c0_i32 = arith.constant 0 : i32
    %c0_i32_0 = arith.constant 0 : i32
    return %arg0, %c0_i32, %arg1 : i32, i32, i32
  }
}

</mosaic_0001>

<bundles_post_ra>
// kernel: tpu_custom_call.1
= control target key start
LH: loop header
LB: loop body
LE: loop exit
PB: predicated region body
PF: predicated region fallthrough
CT: control target
= control target key end

     0   :  { %14 = vsyncpa [#allocation5], 0  ;;  %s1726_s0 = inlined_call_operand.vmem [shape: f32[2,32,256], index: 0, kind: input, shape index: {}]   ;;  %s1727_s1 = inlined_call_operand.vmem [shape: f32[2,2,32,1], index: 1, kind: input, shape index: {}]   ;;  %s1728_s2 = inlined_call_operand.vmem [shape: f32[2,2,32,1], index: 2, kind: input, shape index: {}]   ;;  %s1729_s3 = inlined_call_operand.vmem [shape: f32[64,128], index: 3, kind: input, shape index: {}]   ;;  %s1730_s4 = inlined_call_operand.vmem [shape: f32[32,32], index: 4, kind: input, shape index: {}]   ;;  %s1731_s5 = inlined_call_operand.vmem [shape: f32[32,32], index: 5, kind: input, shape index: {}]   ;;  %s1732_s6 = inlined_call_operand.vmem [shape: f32[32,1], index: 6, kind: input, shape index: {}]   ;;  %s1733_s7 = inlined_call_operand.vmem [shape: f32[32,1], index: 7, kind: input, shape index: {}]   ;;  %s1734_s8 = inlined_call_operand.vmem [shape: f32[32,1], index: 8, kind: input, shape index: {}]   ;;  %s1735_s9 = inlined_call_operand.hbm [shape: f32[2,32,256], index: 9, kind: output, shape index: {}]  }
   0x1   :  { %16 = vsyncpa [#allocation5 + $0x1], 0  ;;  %s1443_s30 = smov 0   ;;  %s1445_s10 = smov 0  }
   0x2   :  { %s1447_s11 = smov 0   ;;  %s1449_s5 = smov 0  }
   0x3   :  { %s1451_s12 = smov 0   ;;  %s1453_s13 = smov 0  }
   0x4   :  { %s1455_s14 = smov 0   ;;  %s1457_s15 = smov 0  }
   0x5 LB: > { %s1095_s16 = sadd.s32 4294967295, %s1383_s15   ;;  %s1096_s17 = sadd.s32 4294967294, %s1383_s15   ;;  %s1383_s15 = sphi %s1457_s15, %s22_s15   ;;  %s1379_s14 = sphi %s1455_s14, %s1753_s14   ;;  %s1375_s13 = sphi %s1453_s13, %s1752_s13   ;;  %s1371_s12 = sphi %s1451_s12, %s1751_s12   ;;  %s1367_s5 = sphi %s1449_s5, %s1750_s5   ;;  %s1363_s11 = sphi %s1447_s11, %s1749_s11   ;;  %s1359_s10 = sphi %s1445_s10, %s1748_s10   ;;  %s1355_s30 = sphi %s1443_s30, %s1747_s30  }
   0x6   : > { %s31_s18 = sadd.s32 1, %s1375_s13  ;;  %s34_s19 = sadd.s32 1, %s1379_s14 }
   0x7   : > { %p32_p0 = scmp.ge.s32.totalorder %s31_s18, 2  ;;  %p50_p1 = scmp.ne.s32.totalorder %s1363_s11, %s1359_s10 }
   0x8   : > { %p51_p2 = scmp.eq.s32.totalorder %s1383_s15, 0  ;;  %p264_p5 = scmp.eq.s32.totalorder %s1095_s16, 3 }
   0x9   : > { %s1755_s18 = smov (%p32_p0, %s31_s18), 0  ;;  %s1757_s19 = smov (!%p32_p0, %s34_s19), %s1379_s14 }
   0xa   : > { %1739 = sst [smem:[#allocation7_spill]] %s1755_s18  ;;  %s39_s20 = ssub.s32 %s1375_s13, %s1755_s18 }
   0xb   : > { %p1495_p3 = por %p51_p2, %p50_p1  ;;  %p36_p4 = scmp.ge.s32.totalorder %s1757_s19, 2 }
   0xc   : > { %p269_p6 = scmp.ne.s32.totalorder %s1359_s10, %s1355_s30  ;;  %p270_p7 = scmp.eq.s32.totalorder %s1096_s17, 3 }
   0xd   : > { %s1759_s19 = smov (%p36_p4, %s1757_s19), 0  ;;  %p1503_p8 = por %p264_p5, %p50_p1 }
   0xe   : > { %1741 = sst [smem:[#allocation8_spill]] %s1759_s19  ;;  %p1507_p9 = por %p270_p7, %p269_p6 }
   0xf   : > { %s38_s24 = ssub.s32 %s1379_s14, %s1759_s19  ;;  %s43_s26 = sadd.s32 1, %s1363_s11 }
  0x10   : > { %s40_s25 = sor.u32 %s39_s20, %s38_s24  ;;  %p1098_p11 = scmp.ge.s32.totalorder %s1383_s15, 4 }
  0x11   : > { %p41_p10 = scmp.eq.s32.totalorder %s40_s25, 0 }
  0x12   : > { %304 = sbr.rel (%p1098_p11) target bundleno = 31 (0x1f), region = 40 }
  0x13   : > { %s1515_s27 = scalar_select %p41_p10, %s1363_s11, %s43_s26  }
  0x17   : > { %307 = sbr.rel (!%p1495_p3) target bundleno = 31 (0x1f), region = 44  ;;  %s309_s28 = sand.u32 (%p1495_p3), 1, %s1363_s11  }
  0x18   : > { %s1100_s29 = sshll.u32 (%p1495_p3), %s1379_s14, 3  ;;  %s1099_s16 = sshll.u32 (%p1495_p3), %s309_s28, 5 }
  0x19   : > { %s313_s17 = sadd.s32 (%p1495_p3), %s1375_s13, %s1100_s29  ;;  %s311_s25 = scalar_lea.vmem (%p1495_p3), [#allocation3], %s1099_s16 }
  0x1a   : > { %s1101_s18 = sshll.u32 (%p1495_p3), %s313_s17, 3 }
  0x1b   : > { %s315_s24 = scalar_lea.vmem (%p1495_p3), %s1726_s0, %s1101_s18 }
  0x1c   : > { %v350_v0 = vld [vmem:[%s315_s24] sm:$0xff]  ;;  %v352_v1 = vld [vmem:[%s315_s24 + $0x10] sm:$0xff] }
  0x1d   : > { %v354_v2 = vld [vmem:[%s315_s24 + $0x20] sm:$0xff]  ;;  %351 = vst [vmem:[%s311_s25] sm:$0xff] %v350_v0  ;;  %353 = vst [vmem:[%s311_s25 + $0x8] sm:$0xff] %v352_v1  ;;  %v356_v3 = vld [vmem:[%s315_s24 + $0x30] sm:$0xff] }
  0x1e   : > { %355 = vst [vmem:[%s311_s25 + $0x10] sm:$0xff] %v354_v2  ;;  %357 = vst [vmem:[%s311_s25 + $0x18] sm:$0xff] %v356_v3 }
  0x1f PF: > { %p1102_p12 = scmp.ge.s32.totalorder %s1383_s15, 1  ;;  %p386_p13 = scmp.lt.s32.totalorder %s1383_s15, 5 }
  0x21   : > { %p387_p0 = pnand %p1102_p12, %p386_p13 }
  0x22   : > { %s1738_s18 = sand.u32 (!%p387_p0), 1, %s1359_s10   ;;  %p446_p1 = scmp.lt.s32.totalorder (!%p387_p0), %s1371_s12, 1 }
  0x23   : > { %390 = sbr.rel (%p387_p0) target bundleno = 766 (0x2fe), region = 90  ;;  %s1531_s19 = sshll.u32 (!%p387_p0), %s1738_s18, 5 }
  0x24   : > { %s395_s21 = scalar_lea.vmem (!%p387_p0), [#allocation3], %s1531_s19  ;;  %p448_p2 = scmp.lt.s32.totalorder (!%p387_p0), %s1367_s5, 1 }
  0x25   : > { %s1385_s29 = smov (!%p387_p0), 1   ;;  %p1111_p3 = scmp.ne.s32.totalorder (!%p387_p0), %s1367_s5, 1 }
  0x28   : > { %v466_v4 = vld [vmem:[%s395_s21 + $0x10] sm:$0xff]  ;;  %v464_v5 = vld [vmem:[%s395_s21] sm:$0xff]  ;;  %v467_v6 = vld [vmem:[%s395_s21 + $0x18] sm:$0xff]  ;;  %s447_s26 = scalar_select %p446_p1, %s1371_s12, 1  ;;  %vm500_vm10 = vcmask 1047560   ;;  %vm558_vm11 = vcmask 7168  }
  0x29   : > { %vm470_vm0 = vcmp.ge.f32.partialorder %v466_v4, 0.0  ;;  %v474_v7 = vmul.f32 0.2, %v466_v4  ;;  %524 = vst [vmem:[#allocation2 + $0x70] sm:$0xff] %v466_v4  ;;  %vm468_vm1 = vcmp.ge.f32.partialorder %v464_v5, 0.0  ;;  %522 = vst [vmem:[#allocation2 + $0x60] sm:$0xff] %v464_v5 }
  0x2a   : > { %v472_v8 = vmul.f32 0.2, %v464_v5  ;;  %525 = vst [vmem:[#allocation2 + $0x78] sm:$0xff] %v467_v6  ;;  %vm471_vm2 = vcmp.ge.f32.partialorder %v467_v6, 0.0  ;;  %v475_v9 = vmul.f32 0.2, %v467_v6 }
  0x2b   : > { %v465_v10 = vld [vmem:[%s395_s21 + $0x8] sm:$0xff]  ;;  %v478_v11 = vsel %vm470_vm0, %v466_v4, %v474_v7  ;;  %s449_s28 = scalar_select %p448_p2, %s1367_s5, 1  ;;  %vm517_vm14 = vcmask 1039360   ;;  %vm579_vm15 = vcmask 1048568  }
  0x2c   : > { %v476_v12 = vsel %vm468_vm1, %v464_v5, %v472_v8  ;;  %vm469_vm3 = vcmp.ge.f32.partialorder %v465_v10, 0.0  ;;  %v473_v13 = vmul.f32 0.2, %v465_v10  ;;  %523 = vst [vmem:[#allocation2 + $0x68] sm:$0xff] %v465_v10  ;;  %492 = vrot.lane.b32.xlu1 %v478_v11, %s1385_s29  ;;  %482 = vst [vmem:[#allocation2 + $0x30] sm:$0xff] %v478_v11  ;;  %v479_v14 = vsel %vm471_vm2, %v467_v6, %v475_v9  ;;  %s1106_s16 = sshll.u32 %s447_s26, 3 }
  0x2d   : > { %488 = vrot.lane.b32.xlu0 %v476_v12, %s1385_s29  ;;  %480 = vst [vmem:[#allocation2 + $0x20] sm:$0xff] %v476_v12  ;;  %483 = vst [vmem:[#allocation2 + $0x38] sm:$0xff] %v479_v14  ;;  %s1105_s17 = sshll.u32 %s449_s28, 2  ;;  %s1386_s26 = smov 127  }
  0x2e   : > { %v477_v15 = vsel %vm469_vm3, %v465_v10, %v473_v13  ;;  %s1540_s20 = sadd.s32 %s1106_s16, %s1105_s17  ;;  %s1572_s17 = scalar_lea.vmem [#allocation4], %s1531_s19 }
  0x2f   : > { %481 = vst [vmem:[#allocation2 + $0x28] sm:$0xff] %v477_v15  ;;  %s1107_s24 = sshll.u32 %s1540_s20, 3  ;;  %s1387_s19 = smov (!%p1111_p3), 127  }
  0x30   : > { %494 = vrot.lane.b32.xlu1 %v479_v14, %s1385_s29  ;;  %s1548_s18 = scalar_lea.vmem %s1728_s2, %s1107_s24  ;;  %s454_s16 = scalar_lea.vmem %s1727_s1, %s1107_s24 }
  0x31   : > { %490 = vrot.lane.b32.xlu0 %v477_v15, %s1385_s29  ;;  %v543_v16 = vld [vmem:[%s1548_s18 + $0x8] sm:$0xff]  ;;  %v542_v17 = vld [vmem:[%s1548_s18] sm:$0xff]  ;;  %v545_v20 = vld [vmem:[%s1548_s18 + $0x18] sm:$0xff] }
  0x32   : > { %v551_v18 = vmul.f32 0.2, %v543_v16  ;;  %v550_v19 = vmul.f32 0.2, %v542_v17  ;;  %vm547_vm4 = vcmp.ge.f32.partialorder %v543_v16, 0.0  ;;  %vm546_vm5 = vcmp.ge.f32.partialorder %v542_v17, 0.0 }
  0x33   : > { %v544_v21 = vld [vmem:[%s1548_s18 + $0x10] sm:$0xff]  ;;  %v553_v24 = vmul.f32 0.2, %v545_v20  ;;  %vm549_vm6 = vcmp.ge.f32.partialorder %v545_v20, 0.0  ;;  %v526_v29 = vld [vmem:[%s454_s16] sm:$0xff]  ;;  %v529_v32 = vld [vmem:[%s454_s16 + $0x18] sm:$0xff] }
  0x34   : > { %507 = vrot.lane.b32.xlu1 %v477_v15, %s1386_s26  ;;  %v555_v22 = vsel %vm547_vm4, %v543_v16, %v551_v18  ;;  %v554_v23 = vsel %vm546_vm5, %v542_v17, %v550_v19  ;;  %v552_v25 = vmul.f32 0.2, %v544_v21  ;;  %vm548_vm7 = vcmp.ge.f32.partialorder %v544_v21, 0.0  ;;  %v528_v28 = vld [vmem:[%s454_s16 + $0x10] sm:$0xff]  ;;  %v527_v33 = vld [vmem:[%s454_s16 + $0x8] sm:$0xff] }
  0x35   : > { %505 = vrot.lane.b32.xlu0 %v476_v12, %s1386_s26  ;;  %v557_v26 = vsel %vm549_vm6, %v545_v20, %v553_v24  ;;  %v536_v30 = vmul.f32 0.2, %v528_v28  ;;  %v534_v31 = vmul.f32 0.2, %v526_v29  ;;  %vm532_vm8 = vcmp.ge.f32.partialorder %v528_v28, 0.0 }
  0x36   : > { %v556_v27 = vsel %vm548_vm7, %v544_v21, %v552_v25  ;;  %vm530_vm9 = vcmp.ge.f32.partialorder %v526_v29, 0.0  ;;  %v537_v36 = vmul.f32 0.2, %v529_v32  ;;  %v535_v37 = vmul.f32 0.2, %v527_v33 }
  0x37   : > { %v540_v34 = vsel %vm532_vm8, %v528_v28, %v536_v30  ;;  %v538_v35 = vsel %vm530_vm9, %v526_v29, %v534_v31  ;;  %vm533_vm12 = vcmp.ge.f32.partialorder %v529_v32, 0.0  ;;  %vm531_vm13 = vcmp.ge.f32.partialorder %v527_v33, 0.0 }
  0x38   : > { %511 = vrot.lane.b32.xlu1 %v479_v14, %s1386_s26  ;;  %v541_v40 = vsel %vm533_vm12, %v529_v32, %v537_v36  ;;  %v539_v41 = vsel %vm531_vm13, %v527_v33, %v535_v37 }
  0x39   : > { %509 = vrot.lane.b32.xlu0 %v478_v11, %s1386_s26 }
  0x3c   : > { %569 = vrot.lane.b32.xlu1 %v555_v22, %s1386_s26 }
  0x3d   : > { %567 = vrot.lane.b32.xlu0 %v554_v23, %s1386_s26 }
  0x40   : > { %573 = vrot.lane.b32.xlu1 %v557_v26, %s1386_s26 }
  0x41   : > { %571 = vrot.lane.b32.xlu0 %v556_v27, %s1386_s26 }
  0x9e   : > { %v493_v38 = vpop.permute.xlu1 %492 }
  0x9f   : > { %v489_v39 = vpop.permute.xlu0 %488  ;;  %503 = vst.msk [vmem:[#allocation2 + $0x10] sm:$0xff] %vm500_vm10, %v493_v38 }
  0xa0   : > { %501 = vst.msk [vmem:[#allocation2] sm:$0xff] %vm500_vm10, %v489_v39 }
  0xa1   : > { %561 = vst.msk [vmem:[#allocation2 + $0x10] sm:$0xff] %vm558_vm11, %v540_v34  ;;  %559 = vst.msk [vmem:[#allocation2] sm:$0xff] %vm558_vm11, %v538_v35 }
  0xa2   : > { %v495_v42 = vpop.permute.xlu1 %494 }
  0xa3   : > { %v491_v43 = vpop.permute.xlu0 %490  ;;  %504 = vst.msk [vmem:[#allocation2 + $0x18] sm:$0xff] %vm500_vm10, %v495_v42 }
  0xa4   : > { %502 = vst.msk [vmem:[#allocation2 + $0x8] sm:$0xff] %vm500_vm10, %v491_v43 }
  0xa5   : > { %562 = vst.msk [vmem:[#allocation2 + $0x18] sm:$0xff] %vm558_vm11, %v541_v40  ;;  %560 = vst.msk [vmem:[#allocation2 + $0x8] sm:$0xff] %vm558_vm11, %v539_v41 }
  0xa6   : > { %v508_v44 = vpop.permute.xlu1 %507 }
  0xa7   : > { %v506_v45 = vpop.permute.xlu0 %505  ;;  %519 = vst.msk [vmem:[#allocation2 + $0x48] sm:$0xff] %vm517_vm14, %v508_v44 }
  0xa8   : > { %518 = vst.msk [vmem:[#allocation2 + $0x40] sm:$0xff] %vm517_vm14, %v506_v45 }
  0xaa   : > { %v512_v46 = vpop.permute.xlu1 %511 }
  0xab   : > { %v510_v47 = vpop.permute.xlu0 %509  ;;  %521 = vst.msk [vmem:[#allocation2 + $0x58] sm:$0xff] %vm517_vm14, %v512_v46 }
  0xac   : > { %520 = vst.msk [vmem:[#allocation2 + $0x50] sm:$0xff] %vm517_vm14, %v510_v47 }
  0xae   : > { %v570_v48 = vpop.permute.xlu1 %569 }
  0xaf   : > { %v568_v49 = vpop.permute.xlu0 %567  ;;  %581 = vst.msk [vmem:[#allocation2 + $0x48] sm:$0xff] %vm579_vm15, %v570_v48 }
  0xb0   : > { %580 = vst.msk [vmem:[#allocation2 + $0x40] sm:$0xff] %vm579_vm15, %v568_v49  ;;  %587 = sbr.rel (%p1111_p3) target bundleno = 305 (0x131), region = 98 }
  0xb2   : > { %v574_v50 = vpop.permute.xlu1 %573 }
  0xb3   : > { %v572_v51 = vpop.permute.xlu0 %571  ;;  %583 = vst.msk [vmem:[#allocation2 + $0x58] sm:$0xff] %vm579_vm15, %v574_v50 }
  0xb4   : > { %582 = vst.msk [vmem:[#allocation2 + $0x50] sm:$0xff] %vm579_vm15, %v572_v51 }
  0xb5   : > { %v590_v52 = vld [vmem:[%s1548_s18 + $0x10] sm:$0xff]  ;;  %v588_v53 = vld [vmem:[%s1548_s18] sm:$0xff]  ;;  %v591_v54 = vld [vmem:[%s1548_s18 + $0x18] sm:$0xff] }
  0xb6   : > { %vm594_vm0 = vcmp.ge.f32.partialorder %v590_v52, 0.0  ;;  %v598_v55 = vmul.f32 0.2, %v590_v52  ;;  %vm592_vm1 = vcmp.ge.f32.partialorder %v588_v53, 0.0  ;;  %v596_v56 = vmul.f32 0.2, %v588_v53 }
  0xb7   : > { %vm595_vm2 = vcmp.ge.f32.partialorder %v591_v54, 0.0  ;;  %v599_v57 = vmul.f32 0.2, %v591_v54  ;;  %v589_v58 = vld [vmem:[%s1548_s18 + $0x8] sm:$0xff] }
  0xb8   : > { %v602_v59 = vsel %vm594_vm0, %v590_v52, %v598_v55  ;;  %v600_v60 = vsel %vm592_vm1, %v588_v53, %v596_v56  ;;  %vm593_vm3 = vcmp.ge.f32.partialorder %v589_v58, 0.0  ;;  %v597_v61 = vmul.f32 0.2, %v589_v58 }
  0xb9   : > { %612 = vrot.lane.b32.xlu1 %v602_v59, %s1387_s19  ;;  %608 = vrot.lane.b32.xlu0 %v600_v60, %s1387_s19  ;;  %v603_v62 = vsel %vm595_vm2, %v591_v54, %v599_v57 }
  0xba   : > { %v601_v63 = vsel %vm593_vm3, %v589_v58, %v597_v61 }
  0xbd   : > { %614 = vrot.lane.b32.xlu1 %v603_v62, %s1387_s19  ;;  %610 = vrot.lane.b32.xlu0 %v601_v63, %s1387_s19 }
 0x12b   : > { %v613_v0 = vpop.permute.xlu1 %612  ;;  %v609_v1 = vpop.permute.xlu0 %608 }
 0x12c   : > { %622 = vst.msk [vmem:[#allocation2 + $0x50] sm:$0xff] %vm579_vm15, %v613_v0  ;;  %620 = vst.msk [vmem:[#allocation2 + $0x40] sm:$0xff] %vm579_vm15, %v609_v1 }
 0x12f   : > { %v615_v2 = vpop.permute.xlu1 %614  ;;  %v611_v3 = vpop.permute.xlu0 %610 }
 0x130   : > { %623 = vst.msk [vmem:[#allocation2 + $0x58] sm:$0xff] %vm579_vm15, %v615_v2  ;;  %621 = vst.msk [vmem:[#allocation2 + $0x48] sm:$0xff] %vm579_vm15, %v611_v3 }
 0x131 PF: > { %v647_v4 = vld [vmem:[#allocation2 + $0x78] sm:$0xff]  ;;  %v646_v5 = vld [vmem:[#allocation2 + $0x70] sm:$0xff]  ;;  %v1388_v6 = vmov 0   ;;  %v645_v7 = vld [vmem:[#allocation2 + $0x68] sm:$0xff]  ;;  %vm849_vm4 = vcmask 261120   ;;  %s1117_s16 = sshll.u32 %s1371_s12, 3 }
 0x132   : > { %1153 = vmatprep.subr.mxu0 %v647_v4  ;;  %1289 = vset.pattern.permute.xlu0 %v1388_v6  ;;  %v644_v8 = vld [vmem:[#allocation2 + $0x60] sm:$0xff]  ;;  %v756_v12 = vld [vmem:[%s1732_s6 + $0x18] sm:$0xff]  ;;  %v754_v13 = vld [vmem:[%s1732_s6 + $0x8] sm:$0xff]  ;;  %s967_s19 = sadd.s32 %s1367_s5, %s1117_s16  ;;  %s970_s12 = sshll.u32 %s1572_s17, 4  ;;  %s1669_s12 = int_to_ptr.vmem [resolvable:$true] %s970_s12 }
 0x133   : > { %1154 = vmatpush3.msra.mxu0 %v647_v4  ;;  %1290 = vset.pattern.permute.xlu1 %v1388_v6  ;;  %v624_v9 = vld [vmem:[%s1729_s3] sm:$0xff]  ;;  %v755_v15 = vld [vmem:[%s1732_s6 + $0x10] sm:$0xff]  ;;  %v639_v18 = vld [vmem:[#allocation2 + $0x38] sm:$0xff]  ;;  %s1118_s18 = sshll.u32 %s967_s19, 7  ;;  %s1744_s25 = sand.u32 1, %s1359_s10  }
 0x134   : > { %1155 = vmatprep.subr.mxu0 %v646_v5  ;;  %1185 = vmatprep.mubr.f32.mxu0 %v624_v9  ;;  %v753_v16 = vld [vmem:[%s1732_s6] sm:$0xff]  ;;  %v782_v20 = vld [vmem:[%s1734_s8 + $0x8] sm:$0xff]  ;;  %v638_v21 = vld [vmem:[#allocation2 + $0x30] sm:$0xff]  ;;  %s1667_s24 = scalar_lea.hbm %s1735_s9, %s1118_s18  ;;  %s1675_s21 = scalar_lea.sflag [#allocation5], %s1744_s25 }
 0x135   : > { %1156 = vmatpush3.msra.mxu0 %v646_v5  ;;  %774 = vperm.xlu0 %1289, %v756_v12   ;;  %v640_v17 = vld [vmem:[#allocation2 + $0x40] sm:$0xff]  ;;  %v637_v22 = vld [vmem:[#allocation2 + $0x28] sm:$0xff]  ;;  %v783_v23 = vld [vmem:[%s1734_s8 + $0x10] sm:$0xff]  ;;  %s1291_s26 = scalar_lea.vmem %s1669_s12, 512  ;;  %s1389_s28 = smov [#allocation4]  }
 0x136   : > { %1157 = vmatprep.subr.mxu0 %v645_v7  ;;  %764 = vperm.xlu1 %1290, %v754_v13   ;;  %v781_v19 = vld [vmem:[%s1734_s8] sm:$0xff]  ;;  %v784_v24 = vld [vmem:[%s1734_s8 + $0x18] sm:$0xff]  ;;  %v826_v28 = vld [vmem:[%s1733_s7 + $0x8] sm:$0xff]  ;;  %p1292_p4 = scmp.ne.s32.totalorder %s1669_s12, %s1291_s26  ;;  %s1295_s29 = sshll.u32 %s1389_s28, 4  ;;  %s1296_s29 = int_to_ptr.vmem [resolvable:$false] %s1295_s29 }
 0x137   : > { %1158 = vmatpush3.msra.mxu0 %v645_v7  ;;  %v643_v10 = vld [vmem:[#allocation2 + $0x58] sm:$0xff]  ;;  %v642_v11 = vld [vmem:[#allocation2 + $0x50] sm:$0xff]  ;;  %v641_v14 = vld [vmem:[#allocation2 + $0x48] sm:$0xff]  ;;  %s1297_s16 = scalar_lea.vmem %s1296_s29, 1024  ;;  %p1298_p7 = scmp.lt.s32.totalorder %s1669_s12, %s1296_s29 }
 0x138   : > { %1159 = vmatprep.subr.mxu0 %v644_v8  ;;  %v636_v25 = vld [vmem:[#allocation2 + $0x20] sm:$0xff]  ;;  %v635_v26 = vld [vmem:[#allocation2 + $0x18] sm:$0xff]  ;;  %v634_v29 = vld [vmem:[#allocation2 + $0x10] sm:$0xff]  ;;  %p1293_p5 = pnand %p1292_p4, %p1503_p8  ;;  %p1299_p10 = scmp.lt.s32.totalorder %s1297_s16, %s1291_s26 }
 0x139   : > { %1160 = vmatpush3.msra.mxu0 %v644_v8  ;;  %769 = vperm.xlu0 %1289, %v755_v15   ;;  %v825_v27 = vld [vmem:[%s1733_s7] sm:$0xff]  ;;  %v633_v30 = vld [vmem:[#allocation2 + $0x8] sm:$0xff]  ;;  %v827_v31 = vld [vmem:[%s1733_s7 + $0x10] sm:$0xff] }
 0x13a   : > { %1161 = vmatprep.subr.mxu0 %v643_v10  ;;  %759 = vperm.xlu1 %1290, %v753_v16   ;;  %v828_v32 = vld [vmem:[%s1733_s7 + $0x18] sm:$0xff]  ;;  %v632_v33 = vld [vmem:[#allocation2] sm:$0xff]  ;;  %v625_v34 = vld [vmem:[%s1729_s3 + $0x8] sm:$0xff]  ;;  %p1294_p6 = pneg %p1293_p5  ;;  %p1300_p11 = por %p1299_p10, %p1298_p7 }
 0x13b   : > { %1162 = vmatpush3.msra.mxu0 %v643_v10  ;;  %v626_v35 = vld [vmem:[%s1729_s3 + $0x10] sm:$0xff]  ;;  %v627_v36 = vld [vmem:[%s1729_s3 + $0x18] sm:$0xff]  ;;  %v628_v37 = vld [vmem:[%s1729_s3 + $0x20] sm:$0xff] }
 0x13c   : > { %1163 = vmatprep.subr.mxu0 %v642_v11  ;;  %v629_v38 = vld [vmem:[%s1729_s3 + $0x28] sm:$0xff]  ;;  %v630_v39 = vld [vmem:[%s1729_s3 + $0x30] sm:$0xff]  ;;  %v631_v40 = vld [vmem:[%s1729_s3 + $0x38] sm:$0xff]  ;;  %p1301_p12 = pnand %p1300_p11, %p1294_p6 }
 0x13d   : > { %1164 = vmatpush3.msra.mxu0 %v642_v11  ;;  %787 = vperm.xlu0 %1289, %v781_v19   ;;  %v821_v41 = vld [vmem:[%s1730_s4] sm:$0xff]  ;;  %v822_v62 = vld [vmem:[%s1730_s4 + $0x8] sm:$0xff]  ;;  %v823_v63 = vld [vmem:[%s1730_s4 + $0x10] sm:$0xff] }
 0x13e   : > { %1165 = vmatprep.subr.mxu0 %v641_v14  ;;  %792 = vperm.xlu1 %1290, %v782_v20   ;;  %v824_v0 = vld [vmem:[%s1730_s4 + $0x18] sm:$0xff] }
 0x13f   : > { %1166 = vmatpush3.msra.mxu0 %v641_v14  ;;  %1205 = vmatprep.mubr.msk.f32.mxu1 %vm849_vm4, %v821_v41 }
 0x140   : > { %1167 = vmatprep.subr.mxu0 %v640_v17 }
 0x141   : > { %1168 = vmatpush3.msra.mxu0 %v640_v17  ;;  %797 = vperm.xlu0 %1289, %v783_v23  }
 0x142   : > { %1169 = vmatprep.subr.mxu0 %v639_v18  ;;  %802 = vperm.xlu1 %1290, %v784_v24  }
 0x143   : > { %1170 = vmatpush3.msra.mxu0 %v639_v18 }
 0x144   : > { %1171 = vmatprep.subr.mxu0 %v638_v21 }
 0x145   : > { %1172 = vmatpush3.msra.mxu0 %v638_v21  ;;  %831 = vperm.xlu0 %1289, %v825_v27  }
 0x146   : > { %1173 = vmatprep.subr.mxu0 %v637_v22  ;;  %836 = vperm.xlu1 %1290, %v826_v28  }
 0x147   : > { %1174 = vmatpush3.msra.mxu0 %v637_v22 }
 0x148   : > { %1175 = vmatprep.subr.mxu0 %v636_v25 }
 0x149   : > { %1176 = vmatpush3.msra.mxu0 %v636_v25  ;;  %841 = vperm.xlu0 %1289, %v827_v31  }
 0x14a   : > { %1177 = vmatprep.subr.mxu0 %v635_v26  ;;  %846 = vperm.xlu1 %1290, %v828_v32  }
 0x14b   : > { %1178 = vmatpush3.msra.mxu0 %v635_v26 }
 0x14c   : > { %1179 = vmatprep.subr.mxu0 %v634_v29 }
 0x14d   : > { %1180 = vmatpush3.msra.mxu0 %v634_v29 }
 0x14e   : > { %1181 = vmatprep.subr.mxu0 %v633_v30 }
 0x14f   : > { %1182 = vmatpush3.msra.mxu0 %v633_v30 }
 0x150   : > { %1183 = vmatprep.subr.mxu0 %v632_v33 }
 0x151   : > { %1184 = vmatpush3.msra.mxu0 %v632_v33 }
 0x152   : > { %1186 = vmatmul.mubr.f32.vlgmr.msra.gmra.mxu0 %v625_v34 }
 0x153   : > { %1188 = vmatprep.mubr.f32.mxu0 %v626_v35 }
 0x156   : > { %1189 = vmatmul.mubr.f32.gmra.mxu0 %v627_v36 }
 0x157   : > { %1191 = vmatprep.mubr.f32.mxu0 %v628_v37 }
 0x15a   : > { %1192 = vmatmul.mubr.f32.gmra.mxu0 %v629_v38 }
 0x15b   : > { %1194 = vmatprep.mubr.f32.mxu0 %v630_v39 }
 0x15e   : > { %1195 = vmatmul.mubr.f32.gmra.mxu0 %v631_v40 }
 0x1b0   : > { %v775_v42 = vpop.permute.xlu0 %774 }
 0x1b1   : > { %v765_v43 = vpop.permute.xlu1 %764 }
 0x1b4   : > { %v770_v47 = vpop.permute.xlu0 %769 }
 0x1b5   : > { %v760_v50 = vpop.permute.xlu1 %759 }
 0x1b8   : > { %v788_v2 = vpop.permute.xlu0 %787 }
 0x1b9   : > { %v793_v1 = vpop.permute.xlu1 %792 }
 0x1bc   : > { %v798_v5 = vpop.permute.xlu0 %797 }
 0x1bd   : > { %v803_v3 = vpop.permute.xlu1 %802 }
 0x1c0   : > { %v832_v8 = vpop.permute.xlu0 %831 }
 0x1c1   : > { %v837_v7 = vpop.permute.xlu1 %836 }
 0x1c4   : > { %v842_v23 = vpop.permute.xlu0 %841 }
 0x1c5   : > { %v847_v14 = vpop.permute.xlu1 %846 }
 0x212   : > { %v1187_v44 = vpop.f32.mrf.mxu0 }
 0x213   : > { %v778_v48 = vadd.f32 %v1187_v44, %v765_v43 }
 0x214   : > { %v714_v45 = vpop.f32.mrf.mxu0 }
 0x215   : > { %v777_v52 = vadd.f32 %v760_v50, %v714_v45  ;;  %v814_v55 = vmul.f32 0.2, %v778_v48  ;;  %vm810_vm7 = vcmp.ge.f32.partialorder %v778_v48, 0.0 }
 0x216   : > { %v1190_v46 = vpop.f32.mrf.mxu0 }
 0x217   : > { %v780_v49 = vadd.f32 %v1190_v46, %v775_v42  ;;  %v813_v58 = vmul.f32 0.2, %v777_v52  ;;  %vm809_vm8 = vcmp.ge.f32.partialorder %v777_v52, 0.0  ;;  %v818_v60 = vsel %vm810_vm7, %v778_v48, %v814_v55 }
 0x218   : > { %v724_v51 = vpop.f32.mrf.mxu0 }
 0x219   : > { %v779_v53 = vadd.f32 %v770_v47, %v724_v51  ;;  %vm812_vm5 = vcmp.ge.f32.partialorder %v780_v49, 0.0  ;;  %v816_v54 = vmul.f32 0.2, %v780_v49  ;;  %v817_v61 = vsel %vm809_vm8, %v777_v52, %v813_v58 }
 0x21a   : > { %v1193_v4 = vpop.f32.mrf.mxu0 }
 0x21b   : > { %v815_v56 = vmul.f32 0.2, %v779_v53  ;;  %v820_v57 = vsel %vm812_vm5, %v780_v49, %v816_v54  ;;  %vm811_vm6 = vcmp.ge.f32.partialorder %v779_v53, 0.0  ;;  %v806_v11 = vadd.f32 %v1193_v4, %v793_v1 }
 0x21c   : > { %1197 = vmatprep.subr.mxu1 %v820_v57  ;;  %v734_v6 = vpop.f32.mrf.mxu0 }
 0x21d   : > { %1198 = vmatpush3.msra.mxu1 %v820_v57  ;;  %v819_v59 = vsel %vm811_vm6, %v779_v53, %v815_v56  ;;  %v805_v15 = vadd.f32 %v788_v2, %v734_v6 }
 0x21e   : > { %1199 = vmatprep.subr.mxu1 %v819_v59  ;;  %v1196_v9 = vpop.f32.mrf.mxu0 }
 0x21f   : > { %1200 = vmatpush3.msra.mxu1 %v819_v59  ;;  %v808_v20 = vadd.f32 %v1196_v9, %v803_v3 }
 0x220   : > { %1201 = vmatprep.subr.mxu1 %v818_v60  ;;  %v744_v18 = vpop.f32.mrf.mxu0 }
 0x221   : > { %1202 = vmatpush3.msra.mxu1 %v818_v60  ;;  %v807_v25 = vadd.f32 %v798_v5, %v744_v18 }
 0x222   : > { %1203 = vmatprep.subr.mxu1 %v817_v61 }
 0x223   : > { %1204 = vmatpush3.msra.mxu1 %v817_v61 }
 0x224   : > { %1206 = vmatmul.mubr.msk.f32.vlgmr.msra.gmra.mxu1 %vm849_vm4, %v822_v62 }
 0x225   : > { %1208 = vmatprep.mubr.msk.f32.mxu1 %vm849_vm4, %v823_v63 }
 0x228   : > { %1209 = vmatmul.mubr.msk.f32.gmra.mxu1 %vm849_vm4, %v824_v0 }
 0x2e4   : > { %v1207_v10 = vpop.f32.mrf.mxu1 }
 0x2e5   : > { %v934_v12 = vadd.f32 %v1207_v10, %v837_v7 }
 0x2e6   : > { %v928_v13 = vpop.f32.mrf.mxu1 }
 0x2e7   : > { %v948_v16 = vadd.f32 %v934_v12, %v806_v11  ;;  %v929_v17 = vadd.f32 %v928_v13, %v832_v8 }
 0x2e8   : > { %v1210_v19 = vpop.f32.mrf.mxu1 }
 0x2e9   : > { %952 = vst [vmem:[%s1572_s17 + $0x8] sm:$0xff] %v948_v16  ;;  %v947_v21 = vadd.f32 %v929_v17, %v805_v15  ;;  %v944_v22 = vadd.f32 %v1210_v19, %v847_v14 }
 0x2ea   : > { %v938_v24 = vpop.f32.mrf.mxu1 }
 0x2eb   : > { %951 = vst [vmem:[%s1572_s17] sm:$0xff] %v947_v21  ;;  %v950_v26 = vadd.f32 %v944_v22, %v808_v20  ;;  %v939_v27 = vadd.f32 %v938_v24, %v842_v23 }
 0x2ed   : > { %954 = vst [vmem:[%s1572_s17 + $0x18] sm:$0xff] %v950_v26  ;;  %v949_v28 = vadd.f32 %v939_v27, %v807_v25 }
 0x2ef   : > { %953 = vst [vmem:[%s1572_s17 + $0x10] sm:$0xff] %v949_v28 }
 0x2f0   : > { %1304 = shalt.err (!%p1301_p12)
}
 0x2f1   : > { %s1305_s17 = scalar_lea.hbm %s1667_s24, 512  ;;  %s1309_s5 = scalar_lea.hbm %s1735_s9, 2048 }
 0x2f2   : > { %p1306_p13 = scmp.ne.s32.totalorder %s1667_s24, %s1305_s17  ;;  %p1310_p2 = scmp.lt.s32.totalorder %s1667_s24, %s1735_s9 }
 0x2f3   : > { %p1311_p3 = scmp.lt.s32.totalorder %s1309_s5, %s1305_s17 }
 0x2f4   : > { %p1307_p0 = pnand %p1306_p13, %p1503_p8 }
 0x2f5   : > { %p1312_p4 = por %p1311_p3, %p1310_p2 }
 0x2f6   : > { %p1308_p1 = pneg %p1307_p0 }
 0x2f8   : > { %p1313_p5 = pnand %p1312_p4, %p1308_p1 }
 0x2fa   : > { %1316 = shalt.err (!%p1313_p5)
}
 0x2fb   : > { %s1390_s26 = smov 128   ;;  %s1391_s28 = smov 256  }
 0x2fc   : > { %s1392_s29 = smov 8  }
 0x2fd   : > { %1211 = dma.vmem_to_hbm [thread:$0]  (%p1503_p8), %s1669_s12, 512, %s1667_s24, %s1675_s21, %s1390_s26, %s1391_s28, %s1392_s29  }
 0x2fe PF: > { %p1217_p6 = scmp.ge.s32.totalorder %s1383_s15, 2  ;;  %s985_s16 = sand.u32 1, %s1355_s30  }
 0x2ff   : > { %s986_s17 = scalar_lea.sflag [#allocation5], %s985_s16 }
 0x300   : > { %p1214_p7 = pnand %p1217_p6, %p1507_p9 }
 0x302   : > { %p1215_p10 = pneg %p1214_p7 }
 0x304   : > { %1350 = dma.done.wait (%p1215_p10), %s986_s17, 512  }
 0x305   : > { %1352 = vsyncadd (%p1215_p10), %s986_s17, 4294966784  ;;  %s22_s15 = sadd.s32 1, %s1383_s15   ;;  %s1745_s22 = sld [smem:[#allocation7_spill]] }
 0x306   : > { %p19_p11 = scmp.ge.s32.totalorder %s22_s15, 6   ;;  %s1746_s24 = sld [smem:[#allocation8_spill]] }
 0x307   : > { %s1747_s30 = smov %s1359_s10  ;;  %s1748_s10 = smov %s1363_s11 }
 0x308   : > { %s1749_s11 = smov %s1515_s27  ;;  %s1750_s5 = smov %s1375_s13 }
 0x309   : > { %s1751_s12 = smov %s1379_s14  ;;  %21 = sbr.rel (!%p19_p11) target bundleno = 5 (0x5), region = 144 }
 0x30b   : > { %s1752_s13 = smov %s1745_s22 }
 0x30c   : > { %s1753_s14 = smov %s1746_s24 }
 0x30e   :  { %991 = vsyncpa [#allocation5], 1 }
 0x30f   :  { %993 = vsyncpa [#allocation5 + $0x1], 1 }

</bundles_post_ra>
